<compile_context>
chip_gen: v5e
topology: v5e:2x2
jax: 0.10.0
libtpu: 0.0.40
codegen_flags: <defaults>
</compile_context>

<pallas_src>
import math
from functools import partial

import jax
import jax.numpy as jnp
from jax.experimental import pallas as pl
from jax.experimental.pallas import tpu as pltpu


# ---------------------------------------------------------------------------
# Helpers
# ---------------------------------------------------------------------------
def _pad_to(x, m):
    return ((int(x) + m - 1) // m) * m


def _sublane_multiple(dtype):
    # Second-minor packing multiple: 8 (4-byte), 16 (2-byte), 32 (1-byte).
    return max(8, 32 // jnp.dtype(dtype).itemsize)


def _vmem_capacity_bytes():
    try:
        return int(pltpu.get_tpu_info().vmem_capacity_bytes)
    except Exception:
        return 64 << 20          # conservative default (v7x per-TC VMEM)


def _enc_blockspec(block_shape, index_map, n_buffers):
    """enc BlockSpec, with deeper prefetch when the grid is long enough."""
    if n_buffers > 2:
        try:
            return pl.BlockSpec(block_shape, index_map,
                                pipeline_mode=pl.Buffered(n_buffers))
        except (TypeError, AttributeError):
            pass                 # older jax: fall back to double buffering
    return pl.BlockSpec(block_shape, index_map)


# ---------------------------------------------------------------------------
# Kernel bodies
# ---------------------------------------------------------------------------
def _energies_mxu(enc2d_ref, wblk_ref):
    """(tT, B*H) @ block-diagonal (B*H, B) on the MXU -> (B, tT) f32 energies."""
    e_tb = jnp.dot(enc2d_ref[...], wblk_ref[...],
                   preferred_element_type=jnp.float32)      # (tT, B), f32 acc
    return e_tb.T                                            # small XLU transpose


def _energies_vpu(enc_ref, w_ref):
    """(tT, B, H) * (1,1,H) multiply in the input dtype, f32 lane reduce."""
    prod = enc_ref[...] * w_ref[...]                         # VPU, no f32 tile copy
    e_tb = jnp.sum(prod, axis=-1, dtype=jnp.float32)         # (tT, B)
    return e_tb.T                                            # (B, tT)


def _softmax_rows(e):
    """Numerically stable softmax along the lane (last) axis of f32 `e`."""
    m = jnp.max(e, axis=-1, keepdims=True)
    p = jnp.exp(e - m)
    s = jnp.sum(p, axis=-1, keepdims=True)
    inv = pl.reciprocal(s, approx=True)        # divide on the (idle) EUP slot
    inv = inv * (2.0 - s * inv)                # one Newton step -> full f32 accuracy
    return p * inv


def _energy_kernel(enc_ref, w_ref, e_ref, *, use_mxu):
    fn = _energies_mxu if use_mxu else _energies_vpu
    e_ref[...] = fn(enc_ref, w_ref)


def _fused_kernel(enc_ref, w_ref, out_ref, *, use_mxu):
    fn = _energies_mxu if use_mxu else _energies_vpu
    out_ref[...] = _softmax_rows(fn(enc_ref, w_ref)).astype(out_ref.dtype)


def _softmax_kernel(e_ref, out_ref):
    out_ref[...] = _softmax_rows(e_ref[...]).astype(out_ref.dtype)


# ---------------------------------------------------------------------------
# Wrapper
# ---------------------------------------------------------------------------
def attn_forward(encoder_outputs, g, weight, bias, v, *, tile_rows=None):
    """Forward of `Attn`: softmax over T of the attention energies, (B, 1, T).

    encoder_outputs: (T, B, H); g: (B, G) or None; weight: (H, H+G); bias: (H,);
    v: (H,).  `tile_rows` optionally forces the T tile size (testing/tuning).
    """
    T, B, H = encoder_outputs.shape
    enc_dtype = encoder_outputs.dtype
    itemsize = jnp.dtype(enc_dtype).itemsize
    sub = _sublane_multiple(enc_dtype)
    out_dtype = enc_dtype                       # bf16 in -> bf16 out (half writeback)

    # --- exact algebraic folding --------------------------------------------
    # e[b,t] = enc[t,b,:] . w_enc + c[b]; c[b] = g[b].w_g + bias.v is T-invariant
    # and cancels exactly under softmax over T, so g and bias are not needed.
    del g, bias
    w_v = jnp.dot(v.astype(jnp.float32), weight.astype(jnp.float32))   # (H+G,)
    w_enc_f32 = w_v[:H]                                                # (H,)

    # --- choose the energy formulation --------------------------------------
    BH = B * H
    wblk_vmem = _pad_to(BH, sub) * _pad_to(B, 128) * itemsize          # padded
    use_mxu = (H % 128 != 0) and (wblk_vmem <= (4 << 20))

    # --- generation-aware, padding-aware tile sizing -------------------------
    vmem_cap = _vmem_capacity_bytes()           # 64 MiB/TC v7x, 128 MiB v5e/v6e
    tile_budget = min(12 << 20, vmem_cap // 8)  # ~8 MiB tiles v7x, 12 MiB else

    if use_mxu:
        row_vmem = _pad_to(BH, 128) * itemsize                     # padded 2D row
    else:
        row_vmem = _pad_to(B, sub) * _pad_to(H, 128) * itemsize    # padded T-slice

    rows_fit = max(1, tile_budget // row_vmem)
    if tile_rows is not None:
        rows_fit = int(tile_rows)
    rows_fit = min(rows_fit, 4096)       # bounds the (tT,B)->(B,tT) transpose temp
    if rows_fit >= T:
        tT, n_tiles = T, 1
    else:
        tT = max(128, (rows_fit // 128) * 128)   # lane-dense (B, tT) output stores
        n_tiles = pl.cdiv(T, tT)

    # --- kernel inputs & specs ------------------------------------------------
    if use_mxu:
        # Collapse (B, H) onto the lane axis (free reshape of contiguous (T,B,H))
        # and reduce on the idle MXU: Wblk[b*H + h, b'] = w_enc[h] * (b == b').
        enc_in = encoder_outputs.reshape(T, BH)
        wblk = (jnp.eye(B, dtype=jnp.float32)[:, None, :]
                * w_enc_f32[None, :, None]).reshape(BH, B)
        w_in = wblk.astype(enc_dtype)
        enc_block, enc_index = (tT, BH), (lambda t: (t, 0))
        w_spec = pl.BlockSpec((BH, B), lambda t: (0, 0))
        flops = 2 * T * BH * B
    else:
        # H already lane-dense (multiple of 128) or Wblk too big: VPU path.
        enc_in = encoder_outputs
        w_in = w_enc_f32.astype(enc_dtype).reshape(1, 1, H)
        enc_block, enc_index = (tT, B, H), (lambda t: (t, 0, 0))
        w_spec = pl.BlockSpec((1, 1, H), lambda t: (0, 0, 0))
        flops = 2 * T * B * H

    n_buffers = 3 if n_tiles >= 3 else 2       # deeper prefetch for short compute
    enc_spec = _enc_blockspec(enc_block, enc_index, n_buffers)

    # --- padded VMEM accounting ----------------------------------------------
    if use_mxu:
        enc_tile_vmem = _pad_to(tT, sub) * _pad_to(BH, 128) * itemsize
        w_vmem = wblk_vmem
    else:
        enc_tile_vmem = tT * _pad_to(B, sub) * _pad_to(H, 128) * itemsize
        w_vmem = sub * _pad_to(H, 128) * itemsize
    e_tmp_vmem = _pad_to(tT, 8) * _pad_to(B, 128) * 4         # pre-transpose f32 temp
    out_tile_vmem = _pad_to(B, 8) * _pad_to(tT, 128) * 4
    vmem_limit = (n_buffers * enc_tile_vmem + 2 * w_vmem + 2 * out_tile_vmem
                  + 2 * e_tmp_vmem + (8 << 20))
    vmem_limit = int(min(max(vmem_limit, 24 << 20), (vmem_cap * 3) // 4))

    compiler_params = pltpu.CompilerParams(
        dimension_semantics=("parallel",),      # independent T tiles -> both TCs
        vmem_limit_bytes=vmem_limit,
    )
    out_isz = jnp.dtype(out_dtype).itemsize
    enc_bytes = int(encoder_outputs.size) * itemsize

    grid = (n_tiles,)
    if n_tiles == 1:
        # Single tile covers all of T: fuse energies + softmax in one kernel.
        out_bt = pl.pallas_call(
            partial(_fused_kernel, use_mxu=use_mxu),
            out_shape=jax.ShapeDtypeStruct((B, T), out_dtype),
            grid=grid,
            in_specs=[enc_spec, w_spec],
            out_specs=pl.BlockSpec((B, T), lambda t: (0, 0)),
            compiler_params=compiler_params,
            cost_estimate=pl.CostEstimate(
                flops=int(flops + 6 * B * T), transcendentals=int(B * T),
                bytes_accessed=int(enc_bytes + B * T * out_isz)),
        )(enc_in, w_in)
    else:
        # Pass 1: T-tiled contiguous slabs -> raw energies e:(B, T) f32.
        e = pl.pallas_call(
            partial(_energy_kernel, use_mxu=use_mxu),
            out_shape=jax.ShapeDtypeStruct((B, T), jnp.float32),
            grid=grid,
            in_specs=[enc_spec, w_spec],
            out_specs=pl.BlockSpec((B, tT), lambda t: (0, t)),
            compiler_params=compiler_params,
            cost_estimate=pl.CostEstimate(
                flops=int(flops), transcendentals=0,
                bytes_accessed=int(enc_bytes + B * T * 4)),
        )(enc_in, w_in)
        # Pass 2: tiny (B, T) softmax over T (T on lanes).
        # TODO(synk): switch to a two-pass / online softmax if (B, T) f32 ever
        # outgrows VMEM (B*T beyond a few million elements).
        out_bt = pl.pallas_call(
            _softmax_kernel,
            out_shape=jax.ShapeDtypeStruct((B, T), out_dtype),
            grid=(1,),
            in_specs=[pl.BlockSpec((B, T), lambda i: (0, 0))],
            out_specs=pl.BlockSpec((B, T), lambda i: (0, 0)),
            compiler_params=pltpu.CompilerParams(
                dimension_semantics=("arbitrary",)),
            cost_estimate=pl.CostEstimate(
                flops=int(6 * B * T), transcendentals=int(B * T),
                bytes_accessed=int(B * T * (4 + out_isz))),
        )(e)

    return out_bt[:, None, :]                   # (B, 1, T)


# ---------------------------------------------------------------------------
# Pure-JAX reference (unfolded PyTorch semantics) for correctness checking.
# ---------------------------------------------------------------------------
def _reference(encoder_outputs, g, weight, bias, v):
    T, B, H = encoder_outputs.shape
    enc_bt = jnp.transpose(encoder_outputs, (1, 0, 2))          # (B, T, H)
    if g is not None and g.shape[-1] > 0:
        g_rep = jnp.broadcast_to(g[:, None, :], (B, T, g.shape[-1]))
        inp = jnp.concatenate([enc_bt, g_rep], axis=2)
    else:
        inp = enc_bt
    energy = inp @ weight.T + bias                              # (B, T, H)
    e = jnp.einsum('h,bth->bt', v, energy)                      # (B, T)
    return jax.nn.softmax(e, axis=1)[:, None, :]                # (B, 1, T)


# ---------------------------------------------------------------------------
# Self-test
# ---------------------------------------------------------------------------
if __name__ == "__main__":
    def make_case(key, T, B, H, G):
        ks = jax.random.split(key, 5)
        enc = jax.random.normal(ks[0], (T, B, H), dtype=jnp.float32)
        g = jax.random.normal(ks[1], (B, G), dtype=jnp.float32) if G > 0 else None
        fan_in = H + G
        bound = 1.0 / math.sqrt(fan_in)
        weight = jax.random.uniform(ks[2], (H, fan_in), minval=-bound,
                                    maxval=bound, dtype=jnp.float32)
        bias = jax.random.uniform(ks[3], (H,), minval=-bound, maxval=bound,
                                  dtype=jnp.float32)
        v = (1.0 / math.sqrt(H)) * jax.random.normal(ks[4], (H,), dtype=jnp.float32)
        return enc, g, weight, bias, v

    # (T, B, H, G, tile_rows) -- small shapes; tile_rows forces the T-tiled
    # pipeline (multi-step grid, Buffered prefetch, ragged last tile) on small data.
    cases = [
        (8,   2, 32,  8, None),   # fused MXU path (H < 128)
        (400, 4, 32,  6, 128),    # T-tiled MXU path: 4 grid steps, ragged tail
        (400, 2, 128, 0, 128),    # T-tiled VPU path (H % 128 == 0), no goal vector
        (8,   2, 256, 4, None),   # fused VPU path
    ]
    keys = jax.random.split(jax.random.PRNGKey(0), len(cases))
    for k, (T, B, H, G, tile_rows) in zip(keys, cases):
        enc, g, weight, bias, v = make_case(k, T, B, H, G)
        out = jax.block_until_ready(
            attn_forward(enc, g, weight, bias, v, tile_rows=tile_rows))
        ref = _reference(enc, g, weight, bias, v)
        assert out.shape == (B, 1, T), (out.shape, (B, 1, T))
        assert jnp.allclose(out, ref, atol=1e-5, rtol=1e-5), \
            f"mismatch vs reference at T={T} B={B} H={H} G={G}"
        assert jnp.allclose(jnp.sum(out, axis=-1), 1.0, atol=1e-5), \
            "softmax rows must sum to 1"

    print("KERNEL_OK")
</pallas_src>

<mosaic_0001>
module attributes {stable_mosaic.version = 11 : i64} {
  func.func @_fused_kernel(%arg0: i32, %arg1: memref<8x64xf32, #tpu.memory_space<vmem>>, %arg2: memref<64x2xf32, #tpu.memory_space<vmem>>, %arg3: memref<2x8xf32, #tpu.memory_space<vmem>>) attributes {dimension_semantics = [#tpu.dimension_semantics<parallel>], iteration_bounds = array<i64: 1>, scalar_prefetch = 0 : i64, scratch_operands = 0 : i64, tpu.core_type = #tpu.core_type<tc>, window_params = [{transform_indices = @transform_0, window_bounds = array<i64: 8, 64>}, {pipeline_mode = #tpu.pipeline_mode<synchronous>, transform_indices = @transform_1, window_bounds = array<i64: 64, 2>}, {pipeline_mode = #tpu.pipeline_mode<synchronous>, transform_indices = @transform_2, window_bounds = array<i64: 2, 8>}]} {
    %c0 = arith.constant 0 : index
    %c0_0 = arith.constant 0 : index
    %0 = vector.load %arg1[%c0, %c0_0] : memref<8x64xf32, #tpu.memory_space<vmem>>, vector<8x64xf32>
    %c0_1 = arith.constant 0 : index
    %c0_2 = arith.constant 0 : index
    %1 = vector.load %arg2[%c0_1, %c0_2] : memref<64x2xf32, #tpu.memory_space<vmem>>, vector<64x2xf32>
    %cst = arith.constant dense<0.000000e+00> : vector<8x2xf32>
    %2 = tpu.matmul %0, %1, %cst {dimension_numbers = #tpu.dot_dimension_numbers<[1], [0], [0], [1], [0, 0, 1, 1], [], []>} : vector<8x64xf32>, vector<64x2xf32>, vector<8x2xf32> -> vector<8x2xf32>
    %3 = tpu.transpose %2, [1, 0] : vector<8x2xf32> -> vector<2x8xf32>
    %cst_3 = arith.constant dense<0xFF800000> : vector<2xf32>
    %4 = vector.multi_reduction <maximumf>, %3, %cst_3 [1] : vector<2x8xf32> to vector<2xf32>
    %5 = vector.shape_cast %4 : vector<2xf32> to vector<2x1xf32>
    %6 = vector.broadcast %5 : vector<2x1xf32> to vector<2x8xf32>
    %7 = arith.subf %3, %6 : vector<2x8xf32>
    %8 = math.exp %7 : vector<2x8xf32>
    %cst_4 = arith.constant dense<0.000000e+00> : vector<2xf32>
    %9 = vector.multi_reduction <add>, %8, %cst_4 [1] : vector<2x8xf32> to vector<2xf32>
    %10 = vector.shape_cast %9 : vector<2xf32> to vector<2x1xf32>
    %11 = tpu.reciprocal %10 {approx = true} : vector<2x1xf32> -> vector<2x1xf32>
    %12 = arith.mulf %10, %11 : vector<2x1xf32>
    %cst_5 = arith.constant 2.000000e+00 : f32
    %13 = vector.broadcast %cst_5 : f32 to vector<2x1xf32>
    %14 = arith.subf %13, %12 : vector<2x1xf32>
    %15 = arith.mulf %11, %14 : vector<2x1xf32>
    %16 = vector.broadcast %15 : vector<2x1xf32> to vector<2x8xf32>
    %17 = arith.mulf %8, %16 : vector<2x8xf32>
    %c0_6 = arith.constant 0 : index
    %c0_7 = arith.constant 0 : index
    %18 = vector.load %arg3[%c0_6, %c0_7] : memref<2x8xf32, #tpu.memory_space<vmem>>, vector<2x8xf32>
    tpu.vector_store %arg3[%c0_6, %c0_7], %17 {strides = array<i32>} : memref<2x8xf32, #tpu.memory_space<vmem>>, vector<2x8xf32>,
    return
  }
  func.func @transform_0(%arg0: i32) -> (i32, i32) {
    %c0_i32 = arith.constant 0 : i32
    %c0_i32_0 = arith.constant 0 : i32
    return %arg0, %c0_i32 : i32, i32
  }
  func.func @transform_1(%arg0: i32) -> (i32, i32) {
    %c0_i32 = arith.constant 0 : i32
    %c0_i32_0 = arith.constant 0 : i32
    %c0_i32_1 = arith.constant 0 : i32
    return %c0_i32, %c0_i32_0 : i32, i32
  }
  func.func @transform_2(%arg0: i32) -> (i32, i32) {
    %c0_i32 = arith.constant 0 : i32
    %c0_i32_0 = arith.constant 0 : i32
    %c0_i32_1 = arith.constant 0 : i32
    return %c0_i32, %c0_i32_0 : i32, i32
  }
}

</mosaic_0001>

<bundles_post_ra>
// kernel: tpu_custom_call.1
= control target key start
LH: loop header
LB: loop body
LE: loop exit
PB: predicated region body
PF: predicated region fallthrough
CT: control target
= control target key end

     0   :  { %s191_s0 = inlined_call_operand.vmem [shape: f32[8,64], index: 0, kind: input, shape index: {}]   ;;  %s192_s1 = inlined_call_operand.vmem [shape: f32[64,2], index: 1, kind: input, shape index: {}]   ;;  %s193_s2 = inlined_call_operand.hbm [shape: f32[2,8], index: 2, kind: output, shape index: {}]  }
   0x1   :  { %v20_v0 = vld [vmem:[%s192_s1 + $0x38] sm:$0xff]  ;;  %v19_v1 = vld [vmem:[%s192_s1 + $0x30] sm:$0xff]  ;;  %v18_v2 = vld [vmem:[%s192_s1 + $0x28] sm:$0xff] }
   0x2   :  { %33 = vmatpush.msra.mxu0 %v20_v0 }
   0x4   :  { %34 = vmatpush.msra.mxu0 %v19_v1 }
   0x5   :  { %7 = vsyncpa [#allocation3], 0  ;;  %v17_v3 = vld [vmem:[%s192_s1 + $0x20] sm:$0xff]  ;;  %v16_v4 = vld [vmem:[%s192_s1 + $0x18] sm:$0xff]  ;;  %vm21_vm0 = vcmask 523264   ;;  %vm77_vm1 = vcmask 58368  }
   0x6   :  { %35 = vmatpush.msra.mxu0 %v18_v2  ;;  %v15_v5 = vld [vmem:[%s192_s1 + $0x10] sm:$0xff]  ;;  %v14_v6 = vld [vmem:[%s192_s1 + $0x8] sm:$0xff]  ;;  %v13_v7 = vld [vmem:[%s192_s1] sm:$0xff]  ;;  %s100_s29 = sshll.u32 %s193_s2, 4  ;;  %s101_s29 = int_to_ptr.hbm [resolvable:$true] %s100_s29 }
   0x7   :  { %v12_v8 = vld [vmem:[%s191_s0] sm:$0xff]  ;;  %s142_s0 = smov [#allocation2]  }
   0x8   :  { %36 = vmatpush.msra.mxu0 %v17_v3  ;;  %s98_s1 = sshll.u32 %s142_s0, 4  ;;  %s99_s1 = int_to_ptr.vmem [resolvable:$true] %s98_s1 }
   0xa   :  { %37 = vmatpush.msra.mxu0 %v16_v4 }
   0xc   :  { %38 = vmatpush.msra.mxu0 %v15_v5 }
   0xe   :  { %39 = vmatpush.msra.mxu0 %v14_v6 }
  0x10   :  { %40 = vmatpush.msra.mxu0 %v13_v7 }
  0x11   :  { %109 = vmatmul.msk.f32.vlgmr.msra.gmra.mxu0 %vm21_vm0, %v12_v8 }
  0x8e   :  { %v42_v9 = vpop.f32.mrf.mxu0 }
  0x8f   :  { %45 = vxpose.xlu0.b32.start.end [1/1] (short) (narrow) %v42_v9, 8 }
 0x133   :  { %v61_v10 = vpop.trf.xlu0 }
 0x134   :  { %v78_v11 = vsel %vm77_vm1, %v61_v10, -inf }
 0x135   :  { %79 = vmax.xlane.f32.xlu0 %v78_v11 }
 0x1a8   :  { %v80_v12 = vpop.xlane.xlu0 %79 }
 0x1a9   :  { %v81_v13 = vsub.f32 %v61_v10, %v80_v12 }
 0x1ab   :  { %v82_v14 = vmul.f32 1.442695, %v81_v13 }
 0x1ad   :  { %112 = vpow2.f32 %v82_v14 }
 0x1b3   :  { %v113_v15 = vpop.eup %112 }
 0x1b4   :  { %v84_v16 = vsel %vm77_vm1, %v113_v15, 0.0 }
 0x1b5   :  { %85 = vadd.xlane.f32.xlu1 %v84_v16 }
 0x228   :  { %v86_v17 = vpop.xlane.xlu1 %85 }
 0x229   :  { %114 = vrcp.f32 %v86_v17 }
 0x22f   :  { %v115_v18 = vpop.eup %114 }
 0x230   :  { %v88_v19 = vmul.f32 %v115_v18, %v86_v17 }
 0x232   :  { %v89_v20 = vsub.f32 2.0, %v88_v19 }
 0x234   :  { %v90_v21 = vmul.f32 %v115_v18, %v89_v20 }
 0x236   :  { %v91_v22 = vmul.f32 %v113_v15, %v90_v21 }
 0x238   :  { %92 = vst.msk [vmem:[#allocation2] sm:$0x3] %vm77_vm1, %v91_v22 }
 0x239   :  { %103 = dma.vmem_to_hbm [thread:$0]  %s99_s1, 32, %s101_s29, [#allocation3]  }
 0x23a   :  { %140 = dma.done.wait [#allocation3], 32  }
 0x23b   :  { %141 = vsyncadd [#allocation3], 4294967264 }
 0x23c   :  { %108 = vsyncpa [#allocation3], 1 }

</bundles_post_ra>
